<compile_context>
chip_gen: v7x
topology: tpu7x:2x2x1
jax: 0.10.0
libtpu: 0.0.40
codegen_flags: <defaults>
</compile_context>

<pallas_src>
import functools

import jax
import jax.numpy as jnp
from jax.experimental import pallas as pl
from jax.experimental.pallas import tpu as pltpu


def _sag_kernel(x_ref, w1_ref, b1_ref, w2_ref, b2_ref, o_ref):
    # x_ref:  (C, TM)   lane-dense tile of pixels (pixels on the lane axis)
    # w1_ref: (R, C)    fc1 weight (resident)
    # b1_ref: (R, 1)    fc1 bias
    # w2_ref: (1, R)    fc2 weight
    # b2_ref: (1, 1)    fc2 bias
    # o_ref:  (1, TM)   sigmoid attention map tile (lane-dense store)
    x = x_ref[...]
    h = jnp.dot(w1_ref[...], x, preferred_element_type=jnp.float32) + b1_ref[...]
    h = jnp.maximum(h, 0.0)                                     # ReLU
    s = jnp.dot(w2_ref[...], h, preferred_element_type=jnp.float32) + b2_ref[...]
    o_ref[...] = jax.nn.sigmoid(s).astype(o_ref.dtype)          # sigmoid


@functools.partial(jax.jit, static_argnames=("tile_m",))
def spatial_attention_gate(x_nchw, w1, b1, w2, b2, *, tile_m=2048):
    """x_nchw: (N, C, H, W); returns (N, 1, H, W) like the PyTorch module."""
    N, C, H, W = x_nchw.shape
    R = w1.shape[0]                       # reduction channels
    HW = H * W

    # NCHW is already (N, C, HW)-contiguous: pure reshape, no transpose, no pad.
    x_rows = x_nchw.reshape(N, C, HW)

    # Conv weights (out, in, 1, 1) -> small matmul weights, kept resident in VMEM.
    w1_mat = w1.reshape(R, C)             # (R, C)
    b1_col = b1.reshape(R, 1)             # (R, 1)  broadcast across lanes
    w2_row = w2.reshape(1, R)             # (1, R)
    b2_mat = b2.reshape(1, 1)             # (1, 1)

    # Lane tile: big (amortize ~0.35us/step), multiple of 128 unless it spans HW.
    tm = min(tile_m, HW)
    grid = (N, pl.cdiv(HW, tm))           # ragged last block handled by Pallas masking

    out = pl.pallas_call(
        _sag_kernel,
        out_shape=jax.ShapeDtypeStruct((N, 1, HW), x_nchw.dtype),
        grid_spec=pltpu.PrefetchScalarGridSpec(
            num_scalar_prefetch=0,
            grid=grid,
            in_specs=[
                pl.BlockSpec((None, C, tm), lambda n, i: (n, 0, i)),  # x tile (C, tm)
                pl.BlockSpec((R, C), lambda n, i: (0, 0)),            # w1 (resident)
                pl.BlockSpec((R, 1), lambda n, i: (0, 0)),            # b1
                pl.BlockSpec((1, R), lambda n, i: (0, 0)),            # w2
                pl.BlockSpec((1, 1), lambda n, i: (0, 0)),            # b2
            ],
            out_specs=pl.BlockSpec((None, 1, tm), lambda n, i: (n, 0, i)),
        ),
        compiler_params=pltpu.CompilerParams(
            dimension_semantics=("parallel", "parallel")),
    )(x_rows, w1_mat, b1_col, w2_row, b2_mat)

    # (N, 1, HW) -> (N, 1, H, W): pure reshape, no transpose.
    return out.reshape(N, 1, H, W)


def _reference(x_nchw, w1, b1, w2, b2):
    """Pure-JAX reference mirroring the PyTorch forward (NCHW throughout)."""
    R, C = w1.shape[0], w1.shape[1]
    h = jnp.einsum("nchw,rc->nrhw", x_nchw, w1.reshape(R, C)) + b1.reshape(1, R, 1, 1)
    h = jnp.maximum(h, 0.0)
    s = jnp.einsum("nrhw,or->nohw", h, w2.reshape(1, R)) + b2.reshape(1, 1, 1, 1)
    return jax.nn.sigmoid(s)


if __name__ == "__main__":
    channel, reduction = 4, 16
    N, H, W = 2, 16, 16

    key = jax.random.PRNGKey(0)
    k_x, k_w1, k_b1, k_w2, k_b2 = jax.random.split(key, 5)

    x = jax.random.normal(k_x, (N, channel, H, W), dtype=jnp.float32)
    # Conv2d(channel, reduction, 1): weight (reduction, channel, 1, 1), bias (reduction,)
    w1 = jax.random.normal(k_w1, (reduction, channel, 1, 1), jnp.float32) * 0.1
    b1 = jax.random.normal(k_b1, (reduction,), jnp.float32) * 0.1
    # Conv2d(reduction, 1, 1): weight (1, reduction, 1, 1), bias (1,)
    w2 = jax.random.normal(k_w2, (1, reduction, 1, 1), jnp.float32) * 0.1
    b2 = jax.random.normal(k_b2, (1,), jnp.float32) * 0.1

    y = spatial_attention_gate(x, w1, b1, w2, b2)
    y = jax.block_until_ready(y)

    y_ref = _reference(x, w1, b1, w2, b2)
    assert y.shape == (N, 1, H, W), y.shape
    assert jnp.allclose(y, y_ref, atol=1e-5, rtol=1e-5), "mismatch vs reference"

    print("KERNEL_OK")
</pallas_src>

<mosaic_0001>
module attributes {stable_mosaic.version = 11 : i64} {
  func.func @_sag_kernel(%arg0: i32, %arg1: i32, %arg2: memref<1x4x256xf32, #tpu.memory_space<vmem>>, %arg3: memref<16x4xf32, #tpu.memory_space<vmem>>, %arg4: memref<16x1xf32, #tpu.memory_space<vmem>>, %arg5: memref<1x16xf32, #tpu.memory_space<vmem>>, %arg6: memref<1x1xf32, #tpu.memory_space<vmem>>, %arg7: memref<1x1x256xf32, #tpu.memory_space<vmem>>) attributes {dimension_semantics = [#tpu.dimension_semantics<parallel>, #tpu.dimension_semantics<parallel>], iteration_bounds = array<i64: 2, 1>, scalar_prefetch = 0 : i64, scratch_operands = 0 : i64, tpu.core_type = #tpu.core_type<tc>, window_params = [{transform_indices = @transform_0, window_bounds = array<i64: 1, 4, 256>}, {pipeline_mode = #tpu.pipeline_mode<synchronous>, transform_indices = @transform_1, window_bounds = array<i64: 16, 4>}, {pipeline_mode = #tpu.pipeline_mode<synchronous>, transform_indices = @transform_2, window_bounds = array<i64: 16, 1>}, {pipeline_mode = #tpu.pipeline_mode<synchronous>, transform_indices = @transform_3, window_bounds = array<i64: 1, 16>}, {pipeline_mode = #tpu.pipeline_mode<synchronous>, transform_indices = @transform_4, window_bounds = array<i64: 1, 1>}, {transform_indices = @transform_5, window_bounds = array<i64: 1, 1, 256>}]} {
    %c0 = arith.constant 0 : index
    %c0_0 = arith.constant 0 : index
    %c0_1 = arith.constant 0 : index
    %0 = vector.load %arg2[%c0, %c0_0, %c0_1] : memref<1x4x256xf32, #tpu.memory_space<vmem>>, vector<1x4x256xf32>
    %1 = vector.shape_cast %0 : vector<1x4x256xf32> to vector<4x256xf32>
    %c0_2 = arith.constant 0 : index
    %c0_3 = arith.constant 0 : index
    %2 = vector.load %arg3[%c0_2, %c0_3] : memref<16x4xf32, #tpu.memory_space<vmem>>, vector<16x4xf32>
    %cst = arith.constant dense<0.000000e+00> : vector<16x256xf32>
    %3 = tpu.matmul %2, %1, %cst {dimension_numbers = #tpu.dot_dimension_numbers<[1], [0], [0], [1], [0, 0, 1, 1], [], []>} : vector<16x4xf32>, vector<4x256xf32>, vector<16x256xf32> -> vector<16x256xf32>
    %c0_4 = arith.constant 0 : index
    %c0_5 = arith.constant 0 : index
    %4 = vector.load %arg4[%c0_4, %c0_5] : memref<16x1xf32, #tpu.memory_space<vmem>>, vector<16x1xf32>
    %5 = vector.broadcast %4 : vector<16x1xf32> to vector<16x256xf32>
    %6 = arith.addf %3, %5 : vector<16x256xf32>
    %cst_6 = arith.constant 0.000000e+00 : f32
    %7 = vector.broadcast %cst_6 : f32 to vector<16x256xf32>
    %8 = arith.maximumf %6, %7 : vector<16x256xf32>
    %c0_7 = arith.constant 0 : index
    %c0_8 = arith.constant 0 : index
    %9 = vector.load %arg5[%c0_7, %c0_8] : memref<1x16xf32, #tpu.memory_space<vmem>>, vector<1x16xf32>
    %cst_9 = arith.constant dense<0.000000e+00> : vector<1x256xf32>
    %10 = tpu.matmul %9, %8, %cst_9 {dimension_numbers = #tpu.dot_dimension_numbers<[1], [0], [0], [1], [0, 0, 1, 1], [], []>} : vector<1x16xf32>, vector<16x256xf32>, vector<1x256xf32> -> vector<1x256xf32>
    %c0_10 = arith.constant 0 : index
    %c0_11 = arith.constant 0 : index
    %11 = vector.load %arg6[%c0_10, %c0_11] : memref<1x1xf32, #tpu.memory_space<vmem>>, vector<1x1xf32>
    %12 = vector.broadcast %11 : vector<1x1xf32> to vector<1x256xf32>
    %13 = arith.addf %10, %12 : vector<1x256xf32>
    %14 = arith.negf %13 : vector<1x256xf32>
    %15 = math.exp %14 : vector<1x256xf32>
    %cst_12 = arith.constant 1.000000e+00 : f32
    %16 = vector.broadcast %cst_12 : f32 to vector<1x256xf32>
    %17 = arith.addf %16, %15 : vector<1x256xf32>
    %18 = arith.divf %16, %17 : vector<1x256xf32>
    %c0_13 = arith.constant 0 : index
    %c0_14 = arith.constant 0 : index
    %c0_15 = arith.constant 0 : index
    %19 = vector.load %arg7[%c0_13, %c0_14, %c0_15] : memref<1x1x256xf32, #tpu.memory_space<vmem>>, vector<1x1x256xf32>
    %20 = vector.shape_cast %19 : vector<1x1x256xf32> to vector<1x256xf32>
    %21 = vector.shape_cast %18 : vector<1x256xf32> to vector<1x1x256xf32>
    tpu.vector_store %arg7[%c0_13, %c0_14, %c0_15], %21 {strides = array<i32>} : memref<1x1x256xf32, #tpu.memory_space<vmem>>, vector<1x1x256xf32>,
    return
  }
  func.func @transform_0(%arg0: i32, %arg1: i32) -> (i32, i32, i32) {
    %c0_i32 = arith.constant 0 : i32
    %c0_i32_0 = arith.constant 0 : i32
    return %arg0, %c0_i32, %arg1 : i32, i32, i32
  }
  func.func @transform_1(%arg0: i32, %arg1: i32) -> (i32, i32) {
    %c0_i32 = arith.constant 0 : i32
    %c0_i32_0 = arith.constant 0 : i32
    %c0_i32_1 = arith.constant 0 : i32
    return %c0_i32, %c0_i32_0 : i32, i32
  }
  func.func @transform_2(%arg0: i32, %arg1: i32) -> (i32, i32) {
    %c0_i32 = arith.constant 0 : i32
    %c0_i32_0 = arith.constant 0 : i32
    %c0_i32_1 = arith.constant 0 : i32
    return %c0_i32, %c0_i32_0 : i32, i32
  }
  func.func @transform_3(%arg0: i32, %arg1: i32) -> (i32, i32) {
    %c0_i32 = arith.constant 0 : i32
    %c0_i32_0 = arith.constant 0 : i32
    %c0_i32_1 = arith.constant 0 : i32
    return %c0_i32, %c0_i32_0 : i32, i32
  }
  func.func @transform_4(%arg0: i32, %arg1: i32) -> (i32, i32) {
    %c0_i32 = arith.constant 0 : i32
    %c0_i32_0 = arith.constant 0 : i32
    %c0_i32_1 = arith.constant 0 : i32
    return %c0_i32, %c0_i32_0 : i32, i32
  }
  func.func @transform_5(%arg0: i32, %arg1: i32) -> (i32, i32, i32) {
    %c0_i32 = arith.constant 0 : i32
    %c0_i32_0 = arith.constant 0 : i32
    return %arg0, %c0_i32, %arg1 : i32, i32, i32
  }
}

</mosaic_0001>

<bundles_post_ra>
// kernel: spatial_attention_gate.1
= control target key start
LH: loop header
LB: loop body
LE: loop exit
PB: predicated region body
PF: predicated region fallthrough
CT: control target
= control target key end

     0   :  { %s696_s20 = smov 0   ;;  %s698_s21 = smov 0   ;;  %s748_s0 = inlined_call_operand.vmem [shape: f32[2,4,256], index: 0, kind: input, shape index: {}]   ;;  %s749_s1 = inlined_call_operand.vmem [shape: f32[16,4], index: 1, kind: input, shape index: {}]   ;;  %s750_s2 = inlined_call_operand.vmem [shape: f32[16,1], index: 2, kind: input, shape index: {}]   ;;  %s751_s3 = inlined_call_operand.vmem [shape: f32[1,16], index: 3, kind: input, shape index: {}]   ;;  %s752_s4 = inlined_call_operand.<no memory space> [shape: f32[1,1], index: 4, kind: input, shape index: {}]   ;;  %s753_s5 = inlined_call_operand.vmem [shape: f32[2,1,256], index: 5, kind: output, shape index: {}]  }
   0x1   :  { %v10_v0 = vstv %s752_s4  ;;  %s700_s22 = smov 0  }
   0x2   :  { %11 = vst [vmem:[#allocation2] sm:$0x1] %v10_v0 }
   0x3 LB: > { %s29_s4 = sadd.s32 1, %s654_s21  ;;  %p580_p0 = scmp.ge.s32.totalorder %s658_s22, 1  ;;  %s658_s22 = sphi %s700_s22, %s17_s22   ;;  %s654_s21 = sphi %s698_s21, %s755_s21   ;;  %s650_s20 = sphi %s696_s20, %s754_s20  }
   0x4   : > { %p31_p1 = scmp.ge.s32.totalorder %s29_s4, 2  ;;  %p210_p2 = scmp.lt.s32.totalorder %s658_s22, 3 }
   0x6   : > { %s757_s4 = smov (%p31_p1, %s29_s4), 0  ;;  %p211_p3 = pnand %p580_p0, %p210_p2 }
   0x7   : > { %p246_p4 = scmp.lt.s32.totalorder (!%p211_p3), %s650_s20, 1  ;;  %v660_v1 = vmov (!%p211_p3), 0.0   ;;  %v267_v2 = vld [vmem:[%s750_s2] sm:$0xff] (!%p211_p3)  ;;  %v661_v3 = vmov (!%p211_p3), 0   ;;  %v268_v4 = vld [vmem:[%s750_s2 + $0x8] sm:$0xff] (!%p211_p3)  ;;  %vm288_vm0 = vcmask (!%p211_p3), 1043456   ;;  %v381_v27 = vlaneseq (!%p211_p3) }
   0x8   : > { %214 = sbr.rel (%p211_p3) target bundleno = 498 (0x1f2), region = 40  ;;  %357 = vmatprep.mubr.f32.mxu0 (!%p211_p3), %v660_v1  ;;  %453 = vmatprep.mubr.f32.mxu1 (!%p211_p3), %v660_v1  ;;  %v265_v7 = vld [vmem:[%s749_s1] sm:$0xff] (!%p211_p3)  ;;  %vm281_vm1 = vcmask (!%p211_p3), 31744   ;;  %v266_v8 = vld [vmem:[%s749_s1 + $0x8] sm:$0xff] (!%p211_p3)  ;;  %vm385_vm2 = vcmask (!%p211_p3), 130048  }
   0x9   : > { %625 = vset.pattern.permute.xlu0 (!%p211_p3), %v661_v3  ;;  %626 = vset.pattern.permute.xlu1 (!%p211_p3), %v661_v3  ;;  %v375_v9 = vld [vmem:[#allocation2] sm:$0x1] (!%p211_p3)  ;;  %v382_v28 = vshrl.u32 (!%p211_p3), %v381_v27, 7  ;;  %v662_v42 = vmov (!%p211_p3), 1966171168   ;;  %vm492_vm3 = vcmp.lt.s32.totalorder (!%p211_p3), %v381_v27, 256 }
   0xa   : > { %271 = vperm.xlu0 (!%p211_p3), %625, %v267_v2   ;;  %378 = vperm.xlu1 (!%p211_p3), %626, %v375_v9   ;;  %v374_v26 = vld [vmem:[%s751_s3] sm:$0x1] (!%p211_p3)  ;;  %v476_v43 = vunpack.c.l.s4 (!%p211_p3), %v662_v42 }
   0xb   : > { %v383_v29 = vsub.s32 (!%p211_p3), 0, %v382_v28 }
   0xc   : > { %v477_v44 = vunpack.c.0.s8 (!%p211_p3), %v476_v43 }
   0xe   : > { %276 = vperm.xlu0 (!%p211_p3), %625, %v268_v4   ;;  %v480_v46 = vsub.s32 (!%p211_p3), %v477_v44, %v382_v28 }
   0xf   : > { %s759_s20 = smov (!%p246_p4, %s650_s20), 1 }
  0x10   : > { %s593_s25 = sshll.u32 %s759_s20, 3  ;;  %s583_s12 = sshll.u32 %s759_s20, 1 }
  0x11   : > { %s253_s30 = scalar_lea.vmem %s748_s0, %s593_s25  ;;  %s262_s15 = scalar_lea.vmem %s753_s5, %s583_s12 }
  0x12   : > { %v264_v5 = vld [vmem:[%s253_s30] sm:$0xff] }
  0x13   : > { %v280_v6 = vcombine.high %v264_v5, %v264_v5 }
  0x15   : > { %584 = vmatprep.subr.msk.mxu0 %vm288_vm0, %v280_v6 }
  0x16   : > { %585 = vmatpush1.msk.msra.mxu0 %vm288_vm0, %v264_v5 }
  0x17   : > { %586 = vmatmul.mubr.msk.f32.vlgmr.msra.gmra.mrb[0].mxu0 %vm281_vm1, %v265_v7 }
  0x18   : > { %363 = vmatprep.mubr.f32.mxu0 %v660_v1 }
  0x1b   : > { %587 = vmatmul.mubr.msk.f32.gmra.mrb[2].mxu0 %vm281_vm1, %v266_v8 }
  0x89   : > { %v272_v10 = vpop.permute.xlu0 %271  ;;  %v379_v30 = vpop.permute.xlu1 %378 }
  0x8a   : > { %v384_v31 = vrot.slane %v379_v30, %v383_v29 }
  0x8d   : > { %v277_v14 = vpop.permute.xlu0 %276 }
  0xea   : > { %v359_v11 = vpop.f32.mrb[0].mxu0 }
  0xeb   : > { %v361_v12 = vpop.f32.mrb[1].mxu0  ;;  %v360_v13 = vadd.f32 %v359_v11, %v272_v10 }
  0xec   : > { %v362_v15 = vadd.f32 %v361_v12, %v272_v10 }
  0xed   : > { %v370_v20 = vmax.f32 %v360_v13, 0.0 }
  0xee   : > { %v365_v16 = vpop.f32.mrb[2].mxu0  ;;  %v371_v22 = vmax.f32 %v362_v15, 0.0 }
  0xef   : > { %v366_v17 = vadd.f32 %v365_v16, %v277_v14  ;;  %v367_v18 = vpop.f32.mrb[3].mxu0 }
  0xf0   : > { %v368_v19 = vadd.f32 %v367_v18, %v277_v14 }
  0xf1   : > { %v372_v21 = vmax.f32 %v366_v17, 0.0 }
  0xf2   : > { %v373_v23 = vmax.f32 %v368_v19, 0.0 }
  0xf3   : > { %v596_v24 = vpack.c.bf16 %v372_v21, %v370_v20 }
  0xf4   : > { %v594_v25 = vpack.c.bf16 %v373_v23, %v371_v22 }
  0xf6   : > { %595 = vmatprep.subr.bf16.mxu1 %v594_v25 }
  0xf7   : > { %597 = vmatpush1.bf16.msra.mxu1 %v596_v24 }
  0xfa   : > { %588 = vmatmul.mubr.msk.f32.vlgmr.msra.gmra.mrb[0].mxu1 %vm385_vm2, %v374_v26 }
 0x1cd   : > { %v455_v32 = vpop.f32.mrb[0].mxu1 }
 0x1ce   : > { %v456_v33 = vadd.f32 %v455_v32, %v384_v31  ;;  %v457_v34 = vpop.f32.mrb[1].mxu1 }
 0x1cf   : > { %v458_v35 = vadd.f32 %v457_v34, %v384_v31 }
 0x1d0   : > { %v589_v36 = vmul.f32 -1.442695, %v456_v33 }
 0x1d1   : > { %v590_v37 = vmul.f32 -1.442695, %v458_v35 }
 0x1d2   : > { %628 = vpow2.f32 %v589_v36 }
 0x1d3   : > { %630 = vpow2.f32 %v590_v37 }
 0x1dc   : > { %v629_v38 = vpop.eup %628 }
 0x1dd   : > { %v631_v39 = vpop.eup %630  ;;  %v466_v40 = vadd.f32 1.0, %v629_v38 }
 0x1de   : > { %v467_v41 = vadd.f32 1.0, %v631_v39 }
 0x1df   : > { %632 = vrcp.f32 %v466_v40 }
 0x1e0   : > { %634 = vrcp.f32 %v467_v41 }
 0x1e9   : > { %v633_v45 = vpop.eup %632 }
 0x1ea   : > { %v635_v47 = vpop.eup %634 }
 0x1eb   : > { %v474_v48 = vcombine.low %v633_v45, %v635_v47 }
 0x1ed   : > { %v481_v49 = vrot.slane %v474_v48, %v480_v46 }
 0x1ef   : > { %v488_v50 = vrot.slane %v481_v49, %v480_v46 }
 0x1f1   : > { %494 = vst.msk [vmem:[%s262_s15] sm:$0x3] %vm492_vm3, %v488_v50 }
 0x1f2 PF: > { %s17_s22 = sadd.s32 1, %s658_s22   ;;  %s754_s20 = smov %s654_s21 }
 0x1f3   : > { %p14_p5 = scmp.ge.s32.totalorder %s17_s22, 4   ;;  %s755_s21 = smov %s757_s4 }
 0x1f5   :  { %16 = sbr.rel (!%p14_p5) target bundleno = 3 (0x3), region = 70 }

</bundles_post_ra>
